<compile_context>
chip_gen: v6e
topology: v6e:2x2x1
jax: 0.10.0
libtpu: 0.0.40
codegen_flags: <defaults>
</compile_context>

<pallas_src>
import functools

import jax
import jax.numpy as jnp
from jax.experimental import pallas as pl
from jax.experimental.pallas import tpu as pltpu

FEAT = 512  # fixed by nn.Linear(512, 1)


def _neuralnet_kernel(k_ref, q_ref, w_ref, b_ref, out_ref, acc_ref, *,
                      ts, seq_len, mask_seq):
    # k_ref, q_ref : [TB, TS, 512]  VMEM tiles (auto double-buffered), any float dtype
    # w_ref        : [1, 512]       VMEM, pinned across the grid (constant index_map)
    # b_ref        : [1]            SMEM scalar (fc1.bias)
    # out_ref      : [TB, 1]        VMEM, resident across the seq (reduction) axis
    # acc_ref      : [TB, 1]        VMEM scratch, running max
    j = pl.program_id(1)

    # Upcast narrow inputs (e.g. bf16) to f32 for the VPU math.
    k = k_ref[...].astype(jnp.float32)
    q = q_ref[...].astype(jnp.float32)
    w = w_ref[...][None, :, :]                              # [1, 1, 512]

    # Linear(512 -> 1) without bias: fused elementwise mul + lane reduce (VPU + XLU).
    y = jnp.sum(k * q * w, axis=-1)                         # [TB, TS]

    if mask_seq:
        # Tail tile along seq: mask out-of-range rows so they can't win the max.
        row = j * ts + jax.lax.broadcasted_iota(jnp.int32, y.shape, 1)
        y = jnp.where(row < seq_len, y, -jnp.inf)

    tile_max = jnp.max(y, axis=1, keepdims=True)            # [TB, 1]

    @pl.when(j == 0)
    def _():
        acc_ref[...] = tile_max

    @pl.when(j > 0)
    def _():
        acc_ref[...] = jnp.maximum(acc_ref[...], tile_max)

    # Single write of the output block; bias is a constant shift, so adding it after
    # the max is exact (out_features == 1).
    @pl.when(j == pl.num_programs(1) - 1)
    def _():
        out_ref[...] = acc_ref[...] + b_ref[0]


@functools.partial(jax.jit, static_argnames=("rows_per_tile",))
def neuralnet_forward(k, q, w, b, *, rows_per_tile=2048):
    """k, q: [bs, seq, 512] (f32 or bf16); w: [1, 512] (fc1.weight); b: [1] -> [bs, 1] f32."""
    bs, seq, feat = k.shape
    assert feat == FEAT and q.shape == k.shape
    w = w.reshape(1, FEAT).astype(jnp.float32)
    b = b.reshape(1).astype(jnp.float32)

    # ---- tile sizing: batch first, then seq -----------------------------------
    # tb: full batch if small (full dim is always layout-legal), else 8 (sublane
    #     multiple); the batch tail is handled by cdiv (padded rows are dropped).
    if bs <= 8:
        tb = bs
    else:
        tb = 8
    # ts: rows_per_tile total rows per tile (~4 MiB of f32 per input tile at 2048).
    target_ts = max(8, rows_per_tile // tb)
    if seq <= target_ts:
        ts = seq                                  # full dim: layout-legal as-is
    else:
        ts = max(8, (target_ts // 8) * 8)         # multiple of 8; tail via cdiv + mask

    grid = (pl.cdiv(bs, tb), pl.cdiv(seq, ts))
    mask_seq = (seq % ts) != 0

    kernel = functools.partial(_neuralnet_kernel, ts=ts, seq_len=seq, mask_seq=mask_seq)

    return pl.pallas_call(
        kernel,
        out_shape=jax.ShapeDtypeStruct((bs, 1), jnp.float32),
        grid_spec=pltpu.PrefetchScalarGridSpec(
            num_scalar_prefetch=0,
            grid=grid,
            in_specs=[
                pl.BlockSpec((tb, ts, FEAT), lambda i, j: (i, j, 0)),   # k
                pl.BlockSpec((tb, ts, FEAT), lambda i, j: (i, j, 0)),   # q
                pl.BlockSpec((1, FEAT), lambda i, j: (0, 0)),           # weight (pinned)
                pl.BlockSpec(memory_space=pltpu.MemorySpace.SMEM),      # bias (scalar)
            ],
            out_specs=pl.BlockSpec((tb, 1), lambda i, j: (i, 0)),        # per-batch max
            scratch_shapes=[pltpu.VMEM((tb, 1), jnp.float32)],           # running max
        ),
        compiler_params=pltpu.CompilerParams(
            # batch axis parallel (shards across the 2 TCs on v7x), seq is the reduction
            dimension_semantics=("parallel", "arbitrary"),
            # 32 MiB scoped: == v6e default, raises v5e's 16 MiB, safe under v7x's 64 MiB
            vmem_limit_bytes=32 * 1024 * 1024,
        ),
    )(k, q, w, b)


def _reference(k, q, w, b):
    x = k.astype(jnp.float32) * q.astype(jnp.float32)
    y = jnp.einsum("bsd,nd->bsn", x, w) + b          # Linear(512, 1)
    return jnp.max(y, axis=1)                        # torch.max(x, dim=1).values


if __name__ == "__main__":
    key = jax.random.PRNGKey(0)
    k_key, q_key, w_key, b_key = jax.random.split(key, 4)

    # torch.nn.Linear default init: U(-1/sqrt(in_features), 1/sqrt(in_features))
    bound = 1.0 / jnp.sqrt(jnp.float32(FEAT))
    w = jax.random.uniform(w_key, (1, FEAT), jnp.float32, -bound, bound)   # fc1.weight
    b = jax.random.uniform(b_key, (1,), jnp.float32, -bound, bound)        # fc1.bias

    # 1) Small-shape check (single grid step).
    bs, seq = 2, 8
    k = jax.random.normal(k_key, (bs, seq, FEAT), dtype=jnp.float32)
    q = jax.random.normal(q_key, (bs, seq, FEAT), dtype=jnp.float32)
    out = jax.block_until_ready(neuralnet_forward(k, q, w, b))
    assert out.shape == (bs, 1)
    assert jnp.allclose(out, _reference(k, q, w, b), atol=1e-4, rtol=1e-4)

    # 2) Seq-reduction path with an unaligned tail: tb=4, ts=128, grid=(1,3), masked tail.
    k2 = jax.random.normal(jax.random.PRNGKey(1), (4, 300, FEAT), dtype=jnp.float32)
    q2 = jax.random.normal(jax.random.PRNGKey(2), (4, 300, FEAT), dtype=jnp.float32)
    out2 = jax.block_until_ready(neuralnet_forward(k2, q2, w, b, rows_per_tile=512))
    assert jnp.allclose(out2, _reference(k2, q2, w, b), atol=1e-4, rtol=1e-4)

    # 3) Multi-block batch axis with a batch tail + bf16 inputs (bandwidth win path):
    #    tb=8, grid_b=cdiv(20,8)=3, ts=256, grid_s=1.
    k3 = jax.random.normal(jax.random.PRNGKey(3), (20, 256, FEAT)).astype(jnp.bfloat16)
    q3 = jax.random.normal(jax.random.PRNGKey(4), (20, 256, FEAT)).astype(jnp.bfloat16)
    out3 = jax.block_until_ready(neuralnet_forward(k3, q3, w, b))
    assert jnp.allclose(out3, _reference(k3, q3, w, b), atol=2e-3, rtol=2e-3)

    print("KERNEL_OK")
</pallas_src>

<mosaic_0001>
module attributes {stable_mosaic.version = 11 : i64} {
  func.func @_neuralnet_kernel(%arg0: i32, %arg1: i32, %arg2: memref<2x8x512xf32, #tpu.memory_space<vmem>>, %arg3: memref<2x8x512xf32, #tpu.memory_space<vmem>>, %arg4: memref<1x512xf32, #tpu.memory_space<vmem>>, %arg5: memref<1xf32, #tpu.memory_space<smem>>, %arg6: memref<2x1xf32, #tpu.memory_space<vmem>>, %arg7: memref<2x1xf32, #tpu.memory_space<vmem>>) attributes {dimension_semantics = [#tpu.dimension_semantics<parallel>, #tpu.dimension_semantics<arbitrary>], iteration_bounds = array<i64: 1, 1>, scalar_prefetch = 0 : i64, scratch_operands = 1 : i64, tpu.core_type = #tpu.core_type<tc>, window_params = [{transform_indices = @transform_0, window_bounds = array<i64: 2, 8, 512>}, {transform_indices = @transform_1, window_bounds = array<i64: 2, 8, 512>}, {pipeline_mode = #tpu.pipeline_mode<synchronous>, transform_indices = @transform_2, window_bounds = array<i64: 1, 512>}, {transform_indices = @transform_3, window_bounds = array<i64: 1>}, {transform_indices = @transform_4, window_bounds = array<i64: 2, 1>}]} {
    %c0 = arith.constant 0 : index
    %c0_0 = arith.constant 0 : index
    %c0_1 = arith.constant 0 : index
    %0 = vector.load %arg2[%c0, %c0_0, %c0_1] : memref<2x8x512xf32, #tpu.memory_space<vmem>>, vector<2x8x512xf32>
    %c0_2 = arith.constant 0 : index
    %c0_3 = arith.constant 0 : index
    %c0_4 = arith.constant 0 : index
    %1 = vector.load %arg3[%c0_2, %c0_3, %c0_4] : memref<2x8x512xf32, #tpu.memory_space<vmem>>, vector<2x8x512xf32>
    %c0_5 = arith.constant 0 : index
    %c0_6 = arith.constant 0 : index
    %2 = vector.load %arg4[%c0_5, %c0_6] : memref<1x512xf32, #tpu.memory_space<vmem>>, vector<1x512xf32>
    %3 = vector.shape_cast %2 : vector<1x512xf32> to vector<1x1x512xf32>
    %4 = arith.mulf %0, %1 : vector<2x8x512xf32>
    %5 = vector.broadcast %3 : vector<1x1x512xf32> to vector<2x8x512xf32>
    %6 = arith.mulf %4, %5 : vector<2x8x512xf32>
    %cst = arith.constant dense<0.000000e+00> : vector<2x8xf32>
    %7 = vector.multi_reduction <add>, %6, %cst [2] : vector<2x8x512xf32> to vector<2x8xf32>
    %cst_7 = arith.constant dense<0xFF800000> : vector<2xf32>
    %8 = vector.multi_reduction <maximumf>, %7, %cst_7 [1] : vector<2x8xf32> to vector<2xf32>
    %9 = vector.shape_cast %8 : vector<2xf32> to vector<2x1xf32>
    %c0_i32 = arith.constant 0 : i32
    %10 = arith.cmpi eq, %arg1, %c0_i32 : i32
    %11 = arith.extui %10 : i1 to i32
    %c0_i32_8 = arith.constant 0 : i32
    %12 = arith.cmpi ne, %11, %c0_i32_8 : i32
    scf.if %12 {
      %c0_13 = arith.constant 0 : index
      %c0_14 = arith.constant 0 : index
      %19 = vector.load %arg7[%c0_13, %c0_14] : memref<2x1xf32, #tpu.memory_space<vmem>>, vector<2x1xf32>
      tpu.vector_store %arg7[%c0_13, %c0_14], %9 {strides = array<i32>} : memref<2x1xf32, #tpu.memory_space<vmem>>, vector<2x1xf32>,
    } else {
    }
    %c0_i32_9 = arith.constant 0 : i32
    %13 = arith.cmpi sgt, %arg1, %c0_i32_9 : i32
    %14 = arith.extui %13 : i1 to i32
    %c0_i32_10 = arith.constant 0 : i32
    %15 = arith.cmpi ne, %14, %c0_i32_10 : i32
    scf.if %15 {
      %c0_13 = arith.constant 0 : index
      %c0_14 = arith.constant 0 : index
      %19 = vector.load %arg7[%c0_13, %c0_14] : memref<2x1xf32, #tpu.memory_space<vmem>>, vector<2x1xf32>
      %20 = arith.maximumf %19, %9 : vector<2x1xf32>
      %c0_15 = arith.constant 0 : index
      %c0_16 = arith.constant 0 : index
      %21 = vector.load %arg7[%c0_15, %c0_16] : memref<2x1xf32, #tpu.memory_space<vmem>>, vector<2x1xf32>
      tpu.vector_store %arg7[%c0_15, %c0_16], %20 {strides = array<i32>} : memref<2x1xf32, #tpu.memory_space<vmem>>, vector<2x1xf32>,
    } else {
    }
    %c0_i32_11 = arith.constant 0 : i32
    %16 = arith.cmpi eq, %arg1, %c0_i32_11 : i32
    %17 = arith.extui %16 : i1 to i32
    %c0_i32_12 = arith.constant 0 : i32
    %18 = arith.cmpi ne, %17, %c0_i32_12 : i32
    scf.if %18 {
      %c0_13 = arith.constant 0 : index
      %c0_14 = arith.constant 0 : index
      %19 = vector.load %arg7[%c0_13, %c0_14] : memref<2x1xf32, #tpu.memory_space<vmem>>, vector<2x1xf32>
      %c0_15 = arith.constant 0 : index
      %20 = memref.load %arg5[%c0_15] : memref<1xf32, #tpu.memory_space<smem>>
      %21 = vector.broadcast %20 : f32 to vector<2x1xf32>
      %22 = arith.addf %19, %21 : vector<2x1xf32>
      %c0_16 = arith.constant 0 : index
      %c0_17 = arith.constant 0 : index
      %23 = vector.load %arg6[%c0_16, %c0_17] : memref<2x1xf32, #tpu.memory_space<vmem>>, vector<2x1xf32>
      tpu.vector_store %arg6[%c0_16, %c0_17], %22 {strides = array<i32>} : memref<2x1xf32, #tpu.memory_space<vmem>>, vector<2x1xf32>,
    } else {
    }
    return
  }
  func.func @transform_0(%arg0: i32, %arg1: i32) -> (i32, i32, i32) {
    %c0_i32 = arith.constant 0 : i32
    %c0_i32_0 = arith.constant 0 : i32
    return %arg0, %arg1, %c0_i32 : i32, i32, i32
  }
  func.func @transform_1(%arg0: i32, %arg1: i32) -> (i32, i32, i32) {
    %c0_i32 = arith.constant 0 : i32
    %c0_i32_0 = arith.constant 0 : i32
    return %arg0, %arg1, %c0_i32 : i32, i32, i32
  }
  func.func @transform_2(%arg0: i32, %arg1: i32) -> (i32, i32) {
    %c0_i32 = arith.constant 0 : i32
    %c0_i32_0 = arith.constant 0 : i32
    %c0_i32_1 = arith.constant 0 : i32
    return %c0_i32, %c0_i32_0 : i32, i32
  }
  func.func @transform_3(%arg0: i32, %arg1: i32) -> i32 {
    %c0_i32 = arith.constant 0 : i32
    %c0_i32_0 = arith.constant 0 : i32
    return %c0_i32 : i32
  }
  func.func @transform_4(%arg0: i32, %arg1: i32) -> (i32, i32) {
    %c0_i32 = arith.constant 0 : i32
    %c0_i32_0 = arith.constant 0 : i32
    return %arg0, %c0_i32 : i32, i32
  }
}

</mosaic_0001>

<bundles_post_ra>
// kernel: neuralnet_forward.1
= control target key start
LH: loop header
LB: loop body
LE: loop exit
PB: predicated region body
PF: predicated region fallthrough
CT: control target
= control target key end

     0   :  { %10 = vsyncpa [#allocation5], 0  ;;  %s250_s0 = inlined_call_operand.hbm [shape: f32[2,8,512], index: 0, kind: input, shape index: {}]   ;;  %s251_s1 = inlined_call_operand.hbm [shape: f32[2,8,512], index: 1, kind: input, shape index: {}]   ;;  %s252_s2 = inlined_call_operand.vmem [shape: f32[1,512], index: 2, kind: input, shape index: {}]   ;;  %s253_s3 = inlined_call_operand.<no memory space> [shape: f32[1], index: 3, kind: input, shape index: {}]   ;;  %s254_s4 = inlined_call_operand.vmem [shape: f32[2,1], index: 4, kind: output, shape index: {}]  }
   0x1   :  { %11 = vsyncpa [#allocation7], 0  ;;  %s206_s15 = smov [#allocation4]  }
   0x2   :  { %s17_s16 = sshll.u32 %s206_s15, 4  ;;  %s18_s16 = int_to_ptr.vmem [resolvable:$true] %s17_s16 }
   0x3   :  { %s170_s17 = scalar_lea.vmem %s18_s16, 1024  ;;  %p175_p1 = scmp.lt.s32.totalorder %s18_s16, %s18_s16 }
   0x4   :  { %p171_p0 = scmp.ne.s32.totalorder %s18_s16, %s170_s17  ;;  %p176_p2 = scmp.lt.s32.totalorder %s170_s17, %s170_s17 }
   0x6   :  { %p177_p3 = por %p176_p2, %p175_p1 }
   0x8   :  { %p178_p4 = pnand %p177_p3, %p171_p0 }
   0xa   :  { %181 = shalt.err (!%p178_p4)
}
   0xb   :  { %s207_s18 = smov 512   ;;  %s208_s19 = smov 32  }
   0xc   :  { %23 = dma.hbm_to_vmem [thread:$0]  %s250_s0, 1024, %s18_s16, [#allocation5], %s207_s18, %s207_s18, %s208_s19  }
   0xd   :  { %s209_s22 = smov [#allocation6]  }
   0xe   :  { %s29_s23 = sshll.u32 %s209_s22, 4  ;;  %s30_s23 = int_to_ptr.vmem [resolvable:$true] %s29_s23 }
   0xf   :  { %s190_s24 = scalar_lea.vmem %s30_s23, 1024  ;;  %p195_p6 = scmp.lt.s32.totalorder %s30_s23, %s30_s23 }
  0x10   :  { %p191_p5 = scmp.ne.s32.totalorder %s30_s23, %s190_s24  ;;  %p196_p7 = scmp.lt.s32.totalorder %s190_s24, %s190_s24 }
  0x12   :  { %p197_p8 = por %p196_p7, %p195_p6 }
  0x14   :  { %p198_p9 = pnand %p197_p8, %p191_p5 }
  0x16   :  { %201 = shalt.err (!%p198_p9)
}
  0x17   :  { %35 = dma.hbm_to_vmem [thread:$0]  %s251_s1, 1024, %s30_s23, [#allocation7], %s207_s18, %s207_s18, %s208_s19  }
  0x18   :  { %202 = dma.done.wait [#allocation5], 1024  }
  0x19   :  { %203 = vsyncadd [#allocation5], 4294966272 }
  0x1a   :  { %204 = dma.done.wait [#allocation7], 1024  }
  0x1b   :  { %205 = vsyncadd [#allocation7], 4294966272  ;;  %v72_v0 = vlaneseq  ;;  %v46_v6 = vld [vmem:[#allocation4] sm:$0xff]  ;;  %v47_v7 = vld [vmem:[#allocation4 + $0x8] sm:$0xff]  ;;  %vm122_vm0 = vcmask 1041409   ;;  %vm125_vm1 = vcmask 58368   ;;  %v148_v58 = vstv %s253_s3 }
  0x1c   :  { %v48_v8 = vld [vmem:[#allocation4 + $0x10] sm:$0xff]  ;;  %v49_v11 = vld [vmem:[#allocation4 + $0x18] sm:$0xff]  ;;  %v54_v12 = vld [vmem:[#allocation6] sm:$0xff]  ;;  %vm133_vm2 = vcmask 1024  }
  0x1d   :  { %v73_v1 = vshrl.u32 %v72_v0, 7  ;;  %v113_v2 = vand.u32 127, %v72_v0  ;;  %v55_v13 = vld [vmem:[#allocation6 + $0x8] sm:$0xff]  ;;  %v56_v14 = vld [vmem:[#allocation6 + $0x10] sm:$0xff]  ;;  %v57_v15 = vld [vmem:[#allocation6 + $0x18] sm:$0xff]  ;;  %v63_v17 = vmul.f32 %v54_v12, %v46_v6 }
  0x1e   :  { %v62_v16 = vld [vmem:[%s252_s2] sm:$0xf]  ;;  %v64_v18 = vmul.f32 %v55_v13, %v47_v7  ;;  %v65_v19 = vmul.f32 %v56_v14, %v48_v8  ;;  %v66_v20 = vmul.f32 %v57_v15, %v49_v11  ;;  %v51_v24 = vld [vmem:[#allocation4 + $0x28] sm:$0xff]  ;;  %v52_v25 = vld [vmem:[#allocation4 + $0x30] sm:$0xff] }
  0x1f   :  { %v116_v3 = vsub.s32 %v113_v2, %v73_v1  ;;  %v74_v4 = vsub.s32 0, %v73_v1  ;;  %v78_v5 = vsub.s32 1, %v73_v1  ;;  %v82_v9 = vsub.s32 2, %v73_v1  ;;  %v50_v23 = vld [vmem:[#allocation4 + $0x20] sm:$0xff]  ;;  %v53_v28 = vld [vmem:[#allocation4 + $0x38] sm:$0xff]  ;;  %v59_v30 = vld [vmem:[#allocation6 + $0x28] sm:$0xff] }
  0x20   :  { %v86_v10 = vsub.s32 3, %v73_v1  ;;  %v58_v29 = vld [vmem:[#allocation6 + $0x20] sm:$0xff]  ;;  %v60_v33 = vld [vmem:[#allocation6 + $0x30] sm:$0xff]  ;;  %v61_v34 = vld [vmem:[#allocation6 + $0x38] sm:$0xff]  ;;  %v68_v36 = vmul.f32 %v59_v30, %v51_v24 }
  0x21   :  { %v75_v21 = vrot.slane %v62_v16, %v74_v4  ;;  %v79_v22 = vrot.slane %v62_v16, %v78_v5  ;;  %v83_v26 = vrot.slane %v62_v16, %v82_v9  ;;  %v67_v35 = vmul.f32 %v58_v29, %v50_v23 }
  0x22   :  { %v87_v27 = vrot.slane %v62_v16, %v86_v10  ;;  %v69_v38 = vmul.f32 %v60_v33, %v52_v25  ;;  %v70_v39 = vmul.f32 %v61_v34, %v53_v28 }
  0x23   :  { %v92_v31 = vmul.f32 %v75_v21, %v63_v17  ;;  %v93_v32 = vmul.f32 %v79_v22, %v64_v18  ;;  %v94_v37 = vmul.f32 %v83_v26, %v65_v19  ;;  %v96_v42 = vmul.f32 %v75_v21, %v67_v35 }
  0x24   :  { %v95_v40 = vmul.f32 %v87_v27, %v66_v20  ;;  %v97_v43 = vmul.f32 %v79_v22, %v68_v36  ;;  %v98_v44 = vmul.f32 %v83_v26, %v69_v38  ;;  %v99_v46 = vmul.f32 %v87_v27, %v70_v39 }
  0x25   :  { %v100_v41 = vadd.f32 %v93_v32, %v92_v31 }
  0x26   :  { %v105_v47 = vadd.f32 %v97_v43, %v96_v42 }
  0x27   :  { %v101_v45 = vadd.f32 %v100_v41, %v94_v37 }
  0x28   :  { %v106_v49 = vadd.f32 %v105_v47, %v98_v44 }
  0x29   :  { %v102_v48 = vadd.f32 %v101_v45, %v95_v40 }
  0x2a   :  { %v107_v50 = vadd.f32 %v106_v49, %v99_v46 }
  0x2b   :  { %103 = vadd.xlane.f32.xlu0 %v102_v48 }
  0x2f   :  { %108 = vadd.xlane.f32.xlu0 %v107_v50 }
  0xb4   :  { %v104_v51 = vpop.xlane.xlu0 %103 }
  0xb5   :  { %v117_v53 = vrot.slane %v104_v51, %v116_v3 }
  0xb8   :  { %v109_v52 = vpop.xlane.xlu0 %108 }
  0xb9   :  { %v121_v54 = vrot.slane %v109_v52, %v116_v3 }
  0xbb   :  { %v123_v55 = vsel %vm122_vm0, %v121_v54, %v117_v53 }
  0xbc   :  { %v126_v56 = vsel %vm125_vm1, %v123_v55, -inf }
  0xbd   :  { %127 = vmax.xlane.f32.xlu1 %v126_v56 }
 0x146   :  { %v128_v57 = vpop.xlane.xlu1 %127 }
 0x147   :  { %134 = vst.msk [vmem:[#allocation2] sm:$0x3] %vm133_vm2, %v128_v57 }
 0x14e   :  { %v146_v59 = vld [vmem:[#allocation2] sm:$0x3] }
 0x14f   :  { %v149_v60 = vadd.f32 %v148_v58, %v146_v59 }
 0x151   :  { %151 = vst.msk [vmem:[%s254_s4] sm:$0x3] %vm133_vm2, %v149_v60 }
 0x152   :  { %156 = vsyncpa [#allocation5], 1 }
 0x153   :  { %157 = vsyncpa [#allocation7], 1 }

</bundles_post_ra>
